<compile_context>
chip_gen: v7x
topology: tpu7x:2x2x1
jax: 0.10.0
libtpu: 0.0.40
codegen_flags: <defaults>
</compile_context>

<pallas_src>
import jax
import jax.numpy as jnp
from jax import lax
from jax.experimental import pallas as pl
from jax.experimental.pallas import tpu as pltpu


def _conv_stats_kernel(x_ref, w_ref, y_ref, st_ref):
    """Circular k=3 conv (channels-last) + per-tile single-pass BN stats."""
    tb, L, C = x_ref.shape
    x = x_ref[...]

    # Circular taps via XLU rotations: roll(+1)[l] = x[l-1], roll(L-1)[l] = x[l+1].
    x_prev = pltpu.roll(x, shift=1, axis=1)
    x_next = pltpu.roll(x, shift=L - 1, axis=1)

    # Three shifted matmuls (no materialized im2col concat); f32 accumulation.
    m = tb * L
    y = jnp.dot(x_prev.reshape(m, C), w_ref[0], preferred_element_type=jnp.float32)
    y = y + jnp.dot(x.reshape(m, C), w_ref[1], preferred_element_type=jnp.float32)
    y = y + jnp.dot(x_next.reshape(m, C), w_ref[2], preferred_element_type=jnp.float32)
    y = y.reshape(tb, L, C)

    y_ref[...] = y.astype(y_ref.dtype)
    # Per-tile BN partial statistics (sum and sum of squares over this tile).
    # TODO(synk): single-pass sum/sum-sq can lose precision for very large B*L;
    # switch to a per-tile-mean (Welford-style) merge if tolerances tighten.
    st_ref[:, 0:1, :] = jnp.sum(y, axis=(0, 1), keepdims=True)
    st_ref[:, 1:2, :] = jnp.sum(y * y, axis=(0, 1), keepdims=True)


def _bn_elu_pool_kernel(y_ref, sc_ref, sh_ref, o_ref):
    """Folded BN affine + ELU(alpha=1) + MaxPool1d(k=3, s=2, p=1) — no scratch."""
    tb, L, C = y_ref.shape
    L_out = o_ref.shape[1]
    n_odd = L // 2
    neg = jnp.float32(-1e30)

    sc = sc_ref[...]
    sh = sh_ref[...]

    def bn_elu(v):
        z = v.astype(jnp.float32) * sc + sh
        return jnp.where(z > 0, z, jnp.exp(jnp.minimum(z, 0.0)) - 1.0)

    # out[j] = max(z[2j-1], z[2j], z[2j+1]) with -inf pool padding at the edges.
    zc = bn_elu(y_ref[:, pl.ds(0, L_out, 2), :])    # z[2j]   (center taps)
    zo = bn_elu(y_ref[:, pl.ds(1, n_odd, 2), :])    # z[2j+1] (right taps)
    if n_odd < L_out:  # odd L: last window's right tap is the pool padding
        zo = jnp.concatenate(
            [zo, jnp.full((tb, L_out - n_odd, C), neg, jnp.float32)], axis=1)

    # Left taps z[2j-1] = zo[j-1]; the j == 0 window uses the pool padding.
    row = lax.broadcasted_iota(jnp.int32, (1, L_out, 1), 1)
    zl = jnp.where(row == 0, neg, pltpu.roll(zo, shift=1, axis=1))

    o_ref[...] = jnp.maximum(jnp.maximum(zl, zc), zo).astype(o_ref.dtype)


def _pick_block_b(B, L, Cp, itemsize):
    """Largest batch tile that fits a v7x-safe VMEM budget, keeps >= 2 grid steps
    when possible (v7x has 2 TensorCores), and targets >= 512 MXU rows."""
    budget = 36 * 1024 * 1024                    # tile budget inside v7x's 64 MiB VMEM
    w_bytes = 2 * 3 * Cp * Cp * itemsize         # double-buffered weight slab
    per_b = L * Cp * (4 * itemsize + 5 * 4)      # 2x in + 2x y tiles + ~5 f32 temporaries
    cap = max(1, (budget - w_bytes) // per_b)
    divisors = [b for b in range(1, B + 1) if B % b == 0 and b <= cap] or [1]
    multi = [b for b in divisors if B // b >= 2] or divisors
    for b in multi:
        if b * L >= 512:                         # enough rows for the 256-row MXU tiles
            return b
    return multi[-1]


@jax.jit
def distilling_layer(x, conv_w, conv_b, gamma, beta):
    """x: [B, L, C] (same layout as the PyTorch module's input). Returns [B, L_out, C]."""
    del conv_b  # cancelled exactly by training-mode BatchNorm mean subtraction
    B, L, C = x.shape
    L_out = (L + 2 * 1 - 3) // 2 + 1

    # Lane-dense channels: pad C up to a multiple of 128 (pad channels are exact
    # zeros through conv/BN/ELU/pool and are sliced off at the end).
    Cp = ((C + 127) // 128) * 128
    pad = Cp - C
    xp = jnp.pad(x, ((0, 0), (0, 0), (0, pad))) if pad else x

    # PyTorch Conv1d weight is [C_out, C_in, K]; pre-shape to [K, C_in, C_out] in the
    # activation dtype so the kernel contracts over the lane (channel) dimension.
    w = jnp.transpose(conv_w, (2, 1, 0)).astype(x.dtype)
    if pad:
        w = jnp.pad(w, ((0, 0), (0, pad), (0, pad)))
    gamma_p = jnp.pad(gamma, (0, pad)) if pad else gamma
    beta_p = jnp.pad(beta, (0, pad)) if pad else beta

    block_b = _pick_block_b(B, L, Cp, jnp.dtype(x.dtype).itemsize)
    nb = B // block_b
    cparams = pltpu.CompilerParams(
        dimension_semantics=("parallel",),
        vmem_limit_bytes=48 * 1024 * 1024,
    )

    # ---- pass 1: conv + per-tile BN partial stats --------------------------------
    # TODO(synk): if profiling shows pass 1 at the HBM roofline with MXU slack
    # (v7x, small C), fuse the passes by recomputing the conv in pass 2 (never
    # materialize y in HBM).
    y, stats = pl.pallas_call(
        _conv_stats_kernel,
        grid=(nb,),
        in_specs=[pl.BlockSpec((block_b, L, Cp), lambda i: (i, 0, 0)),
                  pl.BlockSpec((3, Cp, Cp), lambda i: (0, 0, 0))],
        out_specs=[pl.BlockSpec((block_b, L, Cp), lambda i: (i, 0, 0)),
                   pl.BlockSpec((1, 2, Cp), lambda i: (i, 0, 0))],
        out_shape=[jax.ShapeDtypeStruct((B, L, Cp), x.dtype),
                   jax.ShapeDtypeStruct((nb, 2, Cp), jnp.float32)],
        compiler_params=cparams,
    )(xp, w)

    # ---- tiny per-channel BN folding (plain JAX, O(C) work) ----------------------
    n = jnp.float32(B * L)
    mean = jnp.sum(stats[:, 0, :], axis=0) / n
    var = jnp.maximum(jnp.sum(stats[:, 1, :], axis=0) / n - mean * mean, 0.0)
    scale = gamma_p.astype(jnp.float32) * lax.rsqrt(var + 1e-5)
    shift = beta_p.astype(jnp.float32) - mean * scale

    # ---- pass 2: normalize + ELU + maxpool ---------------------------------------
    out = pl.pallas_call(
        _bn_elu_pool_kernel,
        grid=(nb,),
        in_specs=[pl.BlockSpec((block_b, L, Cp), lambda i: (i, 0, 0)),
                  pl.BlockSpec((1, 1, Cp), lambda i: (0, 0, 0)),
                  pl.BlockSpec((1, 1, Cp), lambda i: (0, 0, 0))],
        out_specs=pl.BlockSpec((block_b, L_out, Cp), lambda i: (i, 0, 0)),
        out_shape=jax.ShapeDtypeStruct((B, L_out, Cp), x.dtype),
        compiler_params=cparams,
    )(y, scale.reshape(1, 1, Cp), shift.reshape(1, 1, Cp))

    return out[:, :, :C] if pad else out


def _reference(x, conv_w, conv_b, gamma, beta):
    """Pure-JAX mirror of the PyTorch forward (training-mode BN) for validation."""
    B, L, C = x.shape
    xc = jnp.transpose(x, (0, 2, 1))                                   # [B, C, L]
    xp = jnp.concatenate([xc[:, :, -1:], xc, xc[:, :, :1]], axis=2)    # circular pad
    y = jnp.zeros((B, C, L), jnp.float32) + conv_b[None, :, None]
    for k in range(3):
        y = y + jnp.einsum('oc,bcl->bol', conv_w[:, :, k], xp[:, :, k:k + L])
    mean = jnp.mean(y, axis=(0, 2), keepdims=True)
    var = jnp.mean((y - mean) ** 2, axis=(0, 2), keepdims=True)
    y = (y - mean) / jnp.sqrt(var + 1e-5)
    y = y * gamma[None, :, None] + beta[None, :, None]
    y = jnp.where(y > 0, y, jnp.exp(jnp.minimum(y, 0.0)) - 1.0)
    L_out = (L - 1) // 2 + 1
    yp = jnp.pad(y, ((0, 0), (0, 0), (1, 1)), constant_values=-jnp.inf)
    out = jnp.stack([jnp.max(yp[:, :, 2 * l:2 * l + 3], axis=2) for l in range(L_out)],
                    axis=2)                                            # [B, C, L_out]
    return jnp.transpose(out, (0, 2, 1))


if __name__ == "__main__":
    key = jax.random.PRNGKey(0)
    B, L, C = 2, 16, 8
    k1, k2, k3 = jax.random.split(key, 3)

    x = jax.random.normal(k1, (B, L, C), jnp.float32)
    conv_w = jax.random.normal(k2, (C, C, 3), jnp.float32) * (1.0 / (3 * C) ** 0.5)
    conv_b = jax.random.normal(k3, (C,), jnp.float32) * 0.1
    gamma = jnp.ones((C,), jnp.float32)    # nn.BatchNorm1d default affine init
    beta = jnp.zeros((C,), jnp.float32)

    out = distilling_layer(x, conv_w, conv_b, gamma, beta)
    out = jax.block_until_ready(out)

    L_out = (L - 1) // 2 + 1
    assert out.shape == (B, L_out, C), out.shape

    ref = _reference(x, conv_w, conv_b, gamma, beta)
    if not jnp.allclose(out, ref, atol=2e-2, rtol=2e-2):
        raise AssertionError("Pallas kernel does not match reference")

    print("KERNEL_OK")
</pallas_src>

<mosaic_0001>
module attributes {stable_mosaic.version = 11 : i64} {
  func.func @_bn_elu_pool_kernel(%arg0: i32, %arg1: memref<1x16x128xf32, #tpu.memory_space<vmem>>, %arg2: memref<1x1x128xf32, #tpu.memory_space<vmem>>, %arg3: memref<1x1x128xf32, #tpu.memory_space<vmem>>, %arg4: memref<1x8x128xf32, #tpu.memory_space<vmem>>) attributes {dimension_semantics = [#tpu.dimension_semantics<parallel>], iteration_bounds = array<i64: 2>, scalar_prefetch = 0 : i64, scratch_operands = 0 : i64, tpu.core_type = #tpu.core_type<tc>, window_params = [{transform_indices = @transform_0, window_bounds = array<i64: 1, 16, 128>}, {pipeline_mode = #tpu.pipeline_mode<synchronous>, transform_indices = @transform_1, window_bounds = array<i64: 1, 1, 128>}, {pipeline_mode = #tpu.pipeline_mode<synchronous>, transform_indices = @transform_2, window_bounds = array<i64: 1, 1, 128>}, {transform_indices = @transform_3, window_bounds = array<i64: 1, 8, 128>}]} {
    %c0 = arith.constant 0 : index
    %c0_0 = arith.constant 0 : index
    %c0_1 = arith.constant 0 : index
    %0 = vector.load %arg2[%c0, %c0_0, %c0_1] : memref<1x1x128xf32, #tpu.memory_space<vmem>>, vector<1x1x128xf32>
    %c0_2 = arith.constant 0 : index
    %c0_3 = arith.constant 0 : index
    %c0_4 = arith.constant 0 : index
    %1 = vector.load %arg3[%c0_2, %c0_3, %c0_4] : memref<1x1x128xf32, #tpu.memory_space<vmem>>, vector<1x1x128xf32>
    %c0_5 = arith.constant 0 : index
    %c0_6 = arith.constant 0 : index
    %c0_7 = arith.constant 0 : index
    %2 = tpu.strided_load %arg1[%c0_5, %c0_6, %c0_7] {strides = array<i32: 1, 2, 1>} : memref<1x16x128xf32, #tpu.memory_space<vmem>>, vector<1x8x128xf32>
    %3 = vector.broadcast %0 : vector<1x1x128xf32> to vector<1x8x128xf32>
    %4 = arith.mulf %2, %3 : vector<1x8x128xf32>
    %5 = vector.broadcast %1 : vector<1x1x128xf32> to vector<1x8x128xf32>
    %6 = arith.addf %4, %5 : vector<1x8x128xf32>
    %cst = arith.constant 0.000000e+00 : f32
    %7 = vector.broadcast %cst : f32 to vector<1x8x128xf32>
    %8 = arith.cmpf ogt, %6, %7 : vector<1x8x128xf32>
    %cst_8 = arith.constant 0.000000e+00 : f32
    %9 = vector.broadcast %cst_8 : f32 to vector<1x8x128xf32>
    %10 = arith.minimumf %6, %9 : vector<1x8x128xf32>
    %11 = math.exp %10 : vector<1x8x128xf32>
    %cst_9 = arith.constant 1.000000e+00 : f32
    %12 = vector.broadcast %cst_9 : f32 to vector<1x8x128xf32>
    %13 = arith.subf %11, %12 : vector<1x8x128xf32>
    %14 = arith.select %8, %6, %13 : vector<1x8x128xi1>, vector<1x8x128xf32>
    %c0_10 = arith.constant 0 : index
    %c1 = arith.constant 1 : index
    %c0_11 = arith.constant 0 : index
    %15 = tpu.strided_load %arg1[%c0_10, %c1, %c0_11] {strides = array<i32: 1, 2, 1>} : memref<1x16x128xf32, #tpu.memory_space<vmem>>, vector<1x8x128xf32>
    %16 = vector.broadcast %0 : vector<1x1x128xf32> to vector<1x8x128xf32>
    %17 = arith.mulf %15, %16 : vector<1x8x128xf32>
    %18 = vector.broadcast %1 : vector<1x1x128xf32> to vector<1x8x128xf32>
    %19 = arith.addf %17, %18 : vector<1x8x128xf32>
    %cst_12 = arith.constant 0.000000e+00 : f32
    %20 = vector.broadcast %cst_12 : f32 to vector<1x8x128xf32>
    %21 = arith.cmpf ogt, %19, %20 : vector<1x8x128xf32>
    %cst_13 = arith.constant 0.000000e+00 : f32
    %22 = vector.broadcast %cst_13 : f32 to vector<1x8x128xf32>
    %23 = arith.minimumf %19, %22 : vector<1x8x128xf32>
    %24 = math.exp %23 : vector<1x8x128xf32>
    %cst_14 = arith.constant 1.000000e+00 : f32
    %25 = vector.broadcast %cst_14 : f32 to vector<1x8x128xf32>
    %26 = arith.subf %24, %25 : vector<1x8x128xf32>
    %27 = arith.select %21, %19, %26 : vector<1x8x128xi1>, vector<1x8x128xf32>
    %28 = tpu.iota {dimensions = array<i32: 1>} : vector<1x8x1xi32>
    %c0_i32 = arith.constant 0 : i32
    %29 = vector.broadcast %c0_i32 : i32 to vector<1x8x1xi32>
    %30 = arith.cmpi eq, %28, %29 : vector<1x8x1xi32>
    %c1_i32 = arith.constant 1 : i32
    %31 = tpu.dynamic_rotate %27 by %c1_i32 dim 1 : vector<1x8x128xf32>, i32 -> vector<1x8x128xf32>
    %cst_15 = arith.constant -1.000000e+30 : f32
    %32 = vector.shape_cast %30 : vector<1x8x1xi1> to vector<1x8x1xi1>
    %33 = vector.broadcast %32 : vector<1x8x1xi1> to vector<1x8x128xi1>
    %34 = vector.broadcast %cst_15 : f32 to vector<1x8x128xf32>
    %35 = arith.select %33, %34, %31 : vector<1x8x128xi1>, vector<1x8x128xf32>
    %36 = arith.maximumf %35, %14 : vector<1x8x128xf32>
    %37 = arith.maximumf %36, %27 : vector<1x8x128xf32>
    %c0_16 = arith.constant 0 : index
    %c0_17 = arith.constant 0 : index
    %c0_18 = arith.constant 0 : index
    %38 = vector.load %arg4[%c0_16, %c0_17, %c0_18] : memref<1x8x128xf32, #tpu.memory_space<vmem>>, vector<1x8x128xf32>
    tpu.vector_store %arg4[%c0_16, %c0_17, %c0_18], %37 {strides = array<i32>} : memref<1x8x128xf32, #tpu.memory_space<vmem>>, vector<1x8x128xf32>,
    return
  }
  func.func @transform_0(%arg0: i32) -> (i32, i32, i32) {
    %c0_i32 = arith.constant 0 : i32
    %c0_i32_0 = arith.constant 0 : i32
    %c0_i32_1 = arith.constant 0 : i32
    return %arg0, %c0_i32, %c0_i32_0 : i32, i32, i32
  }
  func.func @transform_1(%arg0: i32) -> (i32, i32, i32) {
    %c0_i32 = arith.constant 0 : i32
    %c0_i32_0 = arith.constant 0 : i32
    %c0_i32_1 = arith.constant 0 : i32
    %c0_i32_2 = arith.constant 0 : i32
    return %c0_i32, %c0_i32_0, %c0_i32_1 : i32, i32, i32
  }
  func.func @transform_2(%arg0: i32) -> (i32, i32, i32) {
    %c0_i32 = arith.constant 0 : i32
    %c0_i32_0 = arith.constant 0 : i32
    %c0_i32_1 = arith.constant 0 : i32
    %c0_i32_2 = arith.constant 0 : i32
    return %c0_i32, %c0_i32_0, %c0_i32_1 : i32, i32, i32
  }
  func.func @transform_3(%arg0: i32) -> (i32, i32, i32) {
    %c0_i32 = arith.constant 0 : i32
    %c0_i32_0 = arith.constant 0 : i32
    %c0_i32_1 = arith.constant 0 : i32
    return %arg0, %c0_i32, %c0_i32_0 : i32, i32, i32
  }
}

module attributes {stable_mosaic.version = 11 : i64} {
  func.func @_conv_stats_kernel(%arg0: i32, %arg1: memref<1x16x128xf32, #tpu.memory_space<vmem>>, %arg2: memref<3x128x128xf32, #tpu.memory_space<vmem>>, %arg3: memref<1x16x128xf32, #tpu.memory_space<vmem>>, %arg4: memref<1x2x128xf32, #tpu.memory_space<vmem>>) attributes {dimension_semantics = [#tpu.dimension_semantics<parallel>], iteration_bounds = array<i64: 2>, scalar_prefetch = 0 : i64, scratch_operands = 0 : i64, tpu.core_type = #tpu.core_type<tc>, window_params = [{transform_indices = @transform_0, window_bounds = array<i64: 1, 16, 128>}, {pipeline_mode = #tpu.pipeline_mode<synchronous>, transform_indices = @transform_1, window_bounds = array<i64: 3, 128, 128>}, {transform_indices = @transform_2, window_bounds = array<i64: 1, 16, 128>}, {transform_indices = @transform_3, window_bounds = array<i64: 1, 2, 128>}]} {
    %c0 = arith.constant 0 : index
    %c0_0 = arith.constant 0 : index
    %c0_1 = arith.constant 0 : index
    %0 = vector.load %arg1[%c0, %c0_0, %c0_1] : memref<1x16x128xf32, #tpu.memory_space<vmem>>, vector<1x16x128xf32>
    %c1_i32 = arith.constant 1 : i32
    %1 = tpu.dynamic_rotate %0 by %c1_i32 dim 1 : vector<1x16x128xf32>, i32 -> vector<1x16x128xf32>
    %c15_i32 = arith.constant 15 : i32
    %2 = tpu.dynamic_rotate %0 by %c15_i32 dim 1 : vector<1x16x128xf32>, i32 -> vector<1x16x128xf32>
    %3 = vector.shape_cast %1 : vector<1x16x128xf32> to vector<16x128xf32>
    %c0_2 = arith.constant 0 : index
    %c0_3 = arith.constant 0 : index
    %c0_4 = arith.constant 0 : index
    %4 = vector.load %arg2[%c0_2, %c0_3, %c0_4] : memref<3x128x128xf32, #tpu.memory_space<vmem>>, vector<1x128x128xf32>
    %5 = vector.shape_cast %4 : vector<1x128x128xf32> to vector<128x128xf32>
    %cst = arith.constant dense<0.000000e+00> : vector<16x128xf32>
    %6 = tpu.matmul %3, %5, %cst {dimension_numbers = #tpu.dot_dimension_numbers<[1], [0], [0], [1], [0, 0, 1, 1], [], []>} : vector<16x128xf32>, vector<128x128xf32>, vector<16x128xf32> -> vector<16x128xf32>
    %7 = vector.shape_cast %0 : vector<1x16x128xf32> to vector<16x128xf32>
    %c1 = arith.constant 1 : index
    %c0_5 = arith.constant 0 : index
    %c0_6 = arith.constant 0 : index
    %8 = vector.load %arg2[%c1, %c0_5, %c0_6] : memref<3x128x128xf32, #tpu.memory_space<vmem>>, vector<1x128x128xf32>
    %9 = vector.shape_cast %8 : vector<1x128x128xf32> to vector<128x128xf32>
    %cst_7 = arith.constant dense<0.000000e+00> : vector<16x128xf32>
    %10 = tpu.matmul %7, %9, %cst_7 {dimension_numbers = #tpu.dot_dimension_numbers<[1], [0], [0], [1], [0, 0, 1, 1], [], []>} : vector<16x128xf32>, vector<128x128xf32>, vector<16x128xf32> -> vector<16x128xf32>
    %11 = arith.addf %6, %10 : vector<16x128xf32>
    %12 = vector.shape_cast %2 : vector<1x16x128xf32> to vector<16x128xf32>
    %c2 = arith.constant 2 : index
    %c0_8 = arith.constant 0 : index
    %c0_9 = arith.constant 0 : index
    %13 = vector.load %arg2[%c2, %c0_8, %c0_9] : memref<3x128x128xf32, #tpu.memory_space<vmem>>, vector<1x128x128xf32>
    %14 = vector.shape_cast %13 : vector<1x128x128xf32> to vector<128x128xf32>
    %cst_10 = arith.constant dense<0.000000e+00> : vector<16x128xf32>
    %15 = tpu.matmul %12, %14, %cst_10 {dimension_numbers = #tpu.dot_dimension_numbers<[1], [0], [0], [1], [0, 0, 1, 1], [], []>} : vector<16x128xf32>, vector<128x128xf32>, vector<16x128xf32> -> vector<16x128xf32>
    %16 = arith.addf %11, %15 : vector<16x128xf32>
    %17 = vector.shape_cast %16 : vector<16x128xf32> to vector<1x16x128xf32>
    %c0_11 = arith.constant 0 : index
    %c0_12 = arith.constant 0 : index
    %c0_13 = arith.constant 0 : index
    %18 = vector.load %arg3[%c0_11, %c0_12, %c0_13] : memref<1x16x128xf32, #tpu.memory_space<vmem>>, vector<1x16x128xf32>
    tpu.vector_store %arg3[%c0_11, %c0_12, %c0_13], %17 {strides = array<i32>} : memref<1x16x128xf32, #tpu.memory_space<vmem>>, vector<1x16x128xf32>,
    %cst_14 = arith.constant dense<0.000000e+00> : vector<128xf32>
    %19 = vector.multi_reduction <add>, %17, %cst_14 [0, 1] : vector<1x16x128xf32> to vector<128xf32>
    %20 = vector.shape_cast %19 : vector<128xf32> to vector<1x1x128xf32>
    %c0_15 = arith.constant 0 : index
    %c0_16 = arith.constant 0 : index
    %c0_17 = arith.constant 0 : index
    %21 = vector.load %arg4[%c0_15, %c0_16, %c0_17] : memref<1x2x128xf32, #tpu.memory_space<vmem>>, vector<1x1x128xf32>
    tpu.vector_store %arg4[%c0_15, %c0_16, %c0_17], %20 {strides = array<i32>} : memref<1x2x128xf32, #tpu.memory_space<vmem>>, vector<1x1x128xf32>,
    %22 = arith.mulf %17, %17 : vector<1x16x128xf32>
    %cst_18 = arith.constant dense<0.000000e+00> : vector<128xf32>
    %23 = vector.multi_reduction <add>, %22, %cst_18 [0, 1] : vector<1x16x128xf32> to vector<128xf32>
    %24 = vector.shape_cast %23 : vector<128xf32> to vector<1x1x128xf32>
    %c0_19 = arith.constant 0 : index
    %c1_20 = arith.constant 1 : index
    %c0_21 = arith.constant 0 : index
    %25 = vector.load %arg4[%c0_19, %c1_20, %c0_21] : memref<1x2x128xf32, #tpu.memory_space<vmem>>, vector<1x1x128xf32>
    tpu.vector_store %arg4[%c0_19, %c1_20, %c0_21], %24 {strides = array<i32>} : memref<1x2x128xf32, #tpu.memory_space<vmem>>, vector<1x1x128xf32>,
    return
  }
  func.func @transform_0(%arg0: i32) -> (i32, i32, i32) {
    %c0_i32 = arith.constant 0 : i32
    %c0_i32_0 = arith.constant 0 : i32
    %c0_i32_1 = arith.constant 0 : i32
    return %arg0, %c0_i32, %c0_i32_0 : i32, i32, i32
  }
  func.func @transform_1(%arg0: i32) -> (i32, i32, i32) {
    %c0_i32 = arith.constant 0 : i32
    %c0_i32_0 = arith.constant 0 : i32
    %c0_i32_1 = arith.constant 0 : i32
    %c0_i32_2 = arith.constant 0 : i32
    return %c0_i32, %c0_i32_0, %c0_i32_1 : i32, i32, i32
  }
  func.func @transform_2(%arg0: i32) -> (i32, i32, i32) {
    %c0_i32 = arith.constant 0 : i32
    %c0_i32_0 = arith.constant 0 : i32
    %c0_i32_1 = arith.constant 0 : i32
    return %arg0, %c0_i32, %c0_i32_0 : i32, i32, i32
  }
  func.func @transform_3(%arg0: i32) -> (i32, i32, i32) {
    %c0_i32 = arith.constant 0 : i32
    %c0_i32_0 = arith.constant 0 : i32
    %c0_i32_1 = arith.constant 0 : i32
    return %arg0, %c0_i32, %c0_i32_0 : i32, i32, i32
  }
}

</mosaic_0001>

<bundles_post_ra>
// kernel: distilling_layer.3
= control target key start
LH: loop header
LB: loop body
LE: loop exit
PB: predicated region body
PF: predicated region fallthrough
CT: control target
= control target key end

     0   :  { %8 = vsyncpa [#allocation3], 0  ;;  %s536_s0 = inlined_call_operand.vmem [shape: f32[2,16,128], index: 0, kind: input, shape index: {}]   ;;  %s537_s1 = inlined_call_operand.vmem [shape: f32[1,1,128], index: 1, kind: input, shape index: {}]   ;;  %s538_s2 = inlined_call_operand.vmem [shape: f32[1,1,128], index: 2, kind: input, shape index: {}]   ;;  %s539_s3 = inlined_call_operand.hbm [shape: f32[2,8,128], index: 3, kind: output, shape index: {}]  }
   0x1   :  { %10 = vsyncpa [#allocation3 + $0x1], 0  ;;  %s430_s12 = smov 0   ;;  %s432_s13 = smov 0  }
   0x2   :  { %s434_s14 = smov 0   ;;  %s436_s15 = smov 0  }
   0x3 LB: > { %s451_s16 = sadd.s32 4294967295, %s407_s15   ;;  %s285_s17 = sadd.s32 4294967294, %s407_s15   ;;  %s407_s15 = sphi %s436_s15, %s545_s15   ;;  %s403_s14 = sphi %s434_s14, %s544_s14   ;;  %s399_s13 = sphi %s432_s13, %s543_s13   ;;  %s395_s12 = sphi %s430_s12, %s542_s12  }
   0x4   : > { %s455_s18 = sadd.s32 1, %s407_s15   ;;  %s91_s19 = sadd.s32 1, %s403_s14 }
   0x5   : > { %s88_s20 = ssub.s32 %s407_s15, %s455_s18  ;;  %p101_p0 = scmp.ne.s32.totalorder %s403_s14, %s399_s13 }
   0x6   : > { %p89_p1 = scmp.eq.s32.totalorder %s88_s20, 0  ;;  %p102_p2 = scmp.eq.s32.totalorder %s451_s16, 1 }
   0x7   : > { %p107_p3 = scmp.ne.s32.totalorder %s399_s13, %s395_s12  ;;  %p108_p4 = scmp.eq.s32.totalorder %s285_s17, 1 }
   0x8   : > { %s466_s21 = scalar_select %p89_p1, %s403_s14, %s91_s19  }
   0x9   : > { %p468_p5 = por %p102_p2, %p101_p0  ;;  %p472_p6 = por %p108_p4, %p107_p3 }
   0xa   : > { %p288_p7 = scmp.ge.s32.totalorder %s407_s15, 1  ;;  %p140_p8 = scmp.lt.s32.totalorder %s407_s15, 3 }
   0xc   : > { %p141_p9 = pnand %p288_p7, %p140_p8 }
   0xd   : > { %p164_p10 = scmp.lt.s32.totalorder (!%p141_p9), %s451_s16, 1  ;;  %v292_v0 = vld [vmem:[%s537_s1] ss:$0 sm:$0xff] (!%p141_p9)  ;;  %v202_v12 = vlaneseq (!%p141_p9)  ;;  %s161_s6 = sand.u32 (!%p141_p9), 1, %s399_s13  }
   0xe   : > { %144 = sbr.rel (%p141_p9) target bundleno = 70 (0x46), region = 32  ;;  %v293_v1 = vld [vmem:[%s538_s2] ss:$0 sm:$0xff] (!%p141_p9)  ;;  %s289_s7 = sshll.u32 (!%p141_p9), %s161_s6, 3 }
   0xf   : > { %v203_v14 = vshrl.u32 (!%p141_p9), %v202_v12, 7  ;;  %s163_s8 = scalar_lea.vmem (!%p141_p9), [#allocation2], %s289_s7  ;;  %s298_s10 = sshll.u32 (!%p141_p9), %s451_s16, 7 }
  0x10   : > { %s226_s9 = sshll.u32 (!%p141_p9), %s163_s8, 4  ;;  %s496_s19 = scalar_lea.hbm (!%p141_p9), %s539_s3, %s298_s10  ;;  %s491_s9 = int_to_ptr.vmem [resolvable:$true] %s226_s9 }
  0x11   : > { %vm204_vm2 = vcmp.eq.s32.totalorder (!%p141_p9), %v203_v14, 0  ;;  %s213_s20 = scalar_lea.sflag (!%p141_p9), [#allocation3], %s161_s6 }
  0x15   : > { %s165_s24 = scalar_select %p164_p10, %s451_s16, 1 }
  0x16   : > { %s409_s16 = smov [#allocation2]  }
  0x17   : > { %s301_s25 = sshll.u32 %s165_s24, 4  ;;  %s345_s24 = scalar_lea.vmem %s491_s9, 128 }
  0x18   : > { %s168_s30 = scalar_lea.vmem %s536_s0, %s301_s25  ;;  %p346_p11 = scmp.ne.s32.totalorder %s491_s9, %s345_s24 }
  0x19   : > { %v171_v2 = vld [vmem:[%s168_s30] ss:$2 sm:$0xff]  ;;  %v295_v3 = vld [vmem:[%s168_s30 + $0x1] ss:$2 sm:$0xff]  ;;  %s349_s25 = sshll.u32 %s409_s16, 4  ;;  %s350_s25 = int_to_ptr.vmem [resolvable:$false] %s349_s25 }
  0x1a   : > { %v178_v4 = vmul.f32 %v292_v0, %v171_v2  ;;  %v194_v5 = vmul.f32 %v295_v3, %v292_v0  ;;  %p347_p12 = pnand %p346_p11, %p468_p5  ;;  %s351_s26 = scalar_lea.vmem %s350_s25, 256 }
  0x1b   : > { %p352_p0 = scmp.lt.s32.totalorder %s491_s9, %s350_s25  ;;  %p353_p1 = scmp.lt.s32.totalorder %s351_s26, %s345_s24 }
  0x1c   : > { %v185_v6 = vadd.f32 %v293_v1, %v178_v4  ;;  %v195_v7 = vadd.f32 %v293_v1, %v194_v5  ;;  %p348_p13 = pneg %p347_p12 }
  0x1d   : > { %p354_p2 = por %p353_p1, %p352_p0 }
  0x1e   : > { %v187_v8 = vmin.f32 %v185_v6, 0.0  ;;  %v197_v9 = vmin.f32 %v195_v7, 0.0  ;;  %vm196_vm0 = vcmp.gt.f32.partialorder %v195_v7, 0.0  ;;  %vm186_vm1 = vcmp.gt.f32.partialorder %v185_v6, 0.0 }
  0x1f   : > { %p355_p3 = pnand %p354_p2, %p348_p13 }
  0x20   : > { %v188_v10 = vmul.f32 1.442695, %v187_v8  ;;  %v198_v11 = vmul.f32 1.442695, %v197_v9 }
  0x22   : > { %341 = vpow2.f32 %v188_v10 }
  0x23   : > { %343 = vpow2.f32 %v198_v11 }
  0x2c   : > { %v342_v13 = vpop.eup %341 }
  0x2d   : > { %v344_v15 = vpop.eup %343  ;;  %v294_v16 = vadd.f32 -1.0, %v342_v13 }
  0x2e   : > { %v296_v17 = vadd.f32 -1.0, %v344_v15 }
  0x2f   : > { %v191_v19 = vsel %vm186_vm1, %v185_v6, %v294_v16 }
  0x30   : > { %v201_v18 = vsel %vm196_vm0, %v195_v7, %v296_v17 }
  0x31   : > { %v205_v20 = vrot.slane %v201_v18, 7 }
  0x33   : > { %v208_v21 = vsel %vm204_vm2, -1e+30, %v205_v20 }
  0x34   : > { %v209_v22 = vmax.f32 %v208_v21, %v191_v19 }
  0x36   : > { %v210_v23 = vmax.f32 %v209_v22, %v201_v18 }
  0x38   : > { %211 = vst [vmem:[%s163_s8] sm:$0xff] %v210_v23 }
  0x39   : > { %358 = shalt.err (!%p355_p3)
}
  0x3a   : > { %s359_s27 = scalar_lea.hbm %s496_s19, 128  ;;  %s363_s30 = scalar_lea.hbm %s539_s3, 256 }
  0x3b   : > { %p360_p4 = scmp.ne.s32.totalorder %s496_s19, %s359_s27  ;;  %p364_p9 = scmp.lt.u32.totalorder %s496_s19, %s539_s3 }
  0x3c   : > { %p365_p10 = scmp.lt.u32.totalorder %s363_s30, %s359_s27  ;;  %p367_p12 = scmp.lt.u32.totalorder %s359_s27, %s496_s19 }
  0x3d   : > { %p361_p7 = pnand %p360_p4, %p468_p5 }
  0x3e   : > { %p366_p11 = por %p365_p10, %p364_p9 }
  0x3f   : > { %p362_p8 = pneg %p361_p7 }
  0x40   : > { %p368_p13 = por %p367_p12, %p366_p11 }
  0x42   : > { %p369_p0 = pnand %p368_p13, %p362_p8 }
  0x44   : > { %372 = shalt.err (!%p369_p0)
}
  0x45   : > { %302 = dma.vmem_to_hbm [thread:$0]  (%p468_p5), %s491_s9, 128, %s496_s19, %s213_s20  }
  0x46 PF: > { %p308_p1 = scmp.ge.s32.totalorder %s407_s15, 2  ;;  %s238_s6 = sand.u32 1, %s395_s12  }
  0x47   : > { %s239_s7 = scalar_lea.sflag [#allocation3], %s238_s6 }
  0x48   : > { %p305_p2 = pnand %p308_p1, %p472_p6 }
  0x4a   : > { %390 = dma.done.wait (!%p305_p2), %s239_s7, 128  }
  0x4b   : > { %392 = vsyncadd (!%p305_p2), %s239_s7, 4294967168  ;;  %p13_p3 = scmp.ge.s32.totalorder %s455_s18, 4   ;;  %s542_s12 = smov %s399_s13 }
  0x4c   : > { %s543_s13 = smov %s403_s14  ;;  %s544_s14 = smov %s466_s21 }
  0x4d   : > { %s545_s15 = smov %s455_s18  ;;  %15 = sbr.rel (!%p13_p3) target bundleno = 3 (0x3), region = 68 }
  0x54   :  { %244 = vsyncpa [#allocation3], 1 }
  0x55   :  { %246 = vsyncpa [#allocation3 + $0x1], 1 }

// kernel: distilling_layer.2
= control target key start
LH: loop header
LB: loop body
LE: loop exit
PB: predicated region body
PF: predicated region fallthrough
CT: control target
= control target key end

     0   :  { %s920_s12 = smov 0   ;;  %s1122_s0 = inlined_call_operand.vmem [shape: f32[2,16,128], index: 0, kind: input, shape index: {}]   ;;  %s1123_s1 = inlined_call_operand.vmem [shape: f32[3,128,128], index: 1, kind: input, shape index: {}]   ;;  %s1124_s2 = inlined_call_operand.vmem [shape: f32[2,16,128], index: 2, kind: output, shape index: {0}]   ;;  %s1125_s3 = inlined_call_operand.vmem [shape: f32[2,2,128], index: 3, kind: output, shape index: {1}]  }
   0x1 LB: > { %s579_s13 = sadd.s32 4294967295, %s898_s12   ;;  %p583_p0 = scmp.ge.s32.totalorder %s898_s12, 1  ;;  %s898_s12 = sphi %s920_s12, %s14_s12  }
   0x2   : > { %p140_p1 = scmp.lt.s32.totalorder %s898_s12, 3 }
   0x4   : > { %p141_p2 = pnand %p583_p0, %p140_p1 }
   0x5   : > { %v196_v0 = vld [vmem:[%s1123_s1] sm:$0xff] (!%p141_p2)  ;;  %v197_v1 = vld [vmem:[%s1123_s1 + $0x8] sm:$0xff] (!%p141_p2)  ;;  %v198_v2 = vld [vmem:[%s1123_s1 + $0x10] sm:$0xff] (!%p141_p2)  ;;  %p168_p3 = scmp.lt.s32.totalorder (!%p141_p2), %s579_s13, 1  ;;  %v186_v3 = vlaneseq (!%p141_p2) }
   0x6   : > { %144 = sbr.rel (%p141_p2) target bundleno = 304 (0x130), region = 28  ;;  %v816_v4 = vpack.c.bf16 (!%p141_p2), %v197_v1, %v196_v0  ;;  %v199_v5 = vld [vmem:[%s1123_s1 + $0x18] sm:$0xff] (!%p141_p2)  ;;  %v200_v7 = vld [vmem:[%s1123_s1 + $0x20] sm:$0xff] (!%p141_p2)  ;;  %v201_v8 = vld [vmem:[%s1123_s1 + $0x28] sm:$0xff] (!%p141_p2) }
   0x7   : > { %v820_v6 = vpack.c.bf16 (!%p141_p2), %v199_v5, %v198_v2  ;;  %v948_v9 = vshrl.u32 (!%p141_p2), %v186_v3, 7  ;;  %v824_v10 = vpack.c.bf16 (!%p141_p2), %v201_v8, %v200_v7  ;;  %v202_v11 = vld [vmem:[%s1123_s1 + $0x30] sm:$0xff] (!%p141_p2)  ;;  %v589_v12 = vld [vmem:[%s1123_s1 + $0x80] sm:$0xff] (!%p141_p2)  ;;  %v590_v13 = vld [vmem:[%s1123_s1 + $0x88] sm:$0xff] (!%p141_p2) }
   0x8   : > { %817 = vmatprep.subr.bf16.mxu0 (!%p141_p2), %v816_v4  ;;  %v203_v14 = vld [vmem:[%s1123_s1 + $0x38] sm:$0xff] (!%p141_p2)  ;;  %v784_v15 = vpack.c.bf16 (!%p141_p2), %v590_v13, %v589_v12  ;;  %v591_v20 = vld [vmem:[%s1123_s1 + $0x90] sm:$0xff] (!%p141_p2)  ;;  %v593_v23 = vld [vmem:[%s1123_s1 + $0xa0] sm:$0xff] (!%p141_p2) }
   0x9   : > { %819 = vmatpush3.bf16.msra.mxu0 (!%p141_p2), %v816_v4  ;;  %vm188_vm0 = vcmp.lt.s32.totalorder (!%p141_p2), %v948_v9, 1  ;;  %v592_v21 = vld [vmem:[%s1123_s1 + $0x98] sm:$0xff] (!%p141_p2)  ;;  %v828_v24 = vpack.c.bf16 (!%p141_p2), %v203_v14, %v202_v11  ;;  %v594_v26 = vld [vmem:[%s1123_s1 + $0xa8] sm:$0xff] (!%p141_p2)  ;;  %v204_v27 = vld [vmem:[%s1123_s1 + $0x40] sm:$0xff] (!%p141_p2)  ;;  %vm193_vm1 = vcmp.lt.s32.totalorder (!%p141_p2), %v948_v9, 7 }
   0xa   : > { %821 = vmatprep.subr.bf16.mxu0 (!%p141_p2), %v820_v6  ;;  %785 = vmatprep.subr.bf16.mxu1 (!%p141_p2), %v784_v15  ;;  %v788_v22 = vpack.c.bf16 (!%p141_p2), %v592_v21, %v591_v20  ;;  %v205_v28 = vld [vmem:[%s1123_s1 + $0x48] sm:$0xff] (!%p141_p2)  ;;  %v792_v29 = vpack.c.bf16 (!%p141_p2), %v594_v26, %v593_v23  ;;  %v595_v30 = vld [vmem:[%s1123_s1 + $0xb0] sm:$0xff] (!%p141_p2)  ;;  %v596_v31 = vld [vmem:[%s1123_s1 + $0xb8] sm:$0xff] (!%p141_p2) }
   0xb   : > { %787 = vmatpush3.bf16.msra.mxu1 (!%p141_p2), %v784_v15  ;;  %v832_v32 = vpack.c.bf16 (!%p141_p2), %v205_v28, %v204_v27  ;;  %v206_v33 = vld [vmem:[%s1123_s1 + $0x50] sm:$0xff] (!%p141_p2)  ;;  %v207_v34 = vld [vmem:[%s1123_s1 + $0x58] sm:$0xff] (!%p141_p2)  ;;  %v796_v35 = vpack.c.bf16 (!%p141_p2), %v596_v31, %v595_v30  ;;  %v597_v36 = vld [vmem:[%s1123_s1 + $0xc0] sm:$0xff] (!%p141_p2) }
   0xc   : > { %789 = vmatprep.subr.bf16.mxu1 (!%p141_p2), %v788_v22  ;;  %v598_v37 = vld [vmem:[%s1123_s1 + $0xc8] sm:$0xff] (!%p141_p2)  ;;  %v836_v38 = vpack.c.bf16 (!%p141_p2), %v207_v34, %v206_v33  ;;  %v208_v39 = vld [vmem:[%s1123_s1 + $0x60] sm:$0xff] (!%p141_p2)  ;;  %v599_v42 = vld [vmem:[%s1123_s1 + $0xd0] sm:$0xff] (!%p141_p2) }
   0xd   : > { %s1127_s13 = smov (!%p168_p3, %s579_s13), 1  ;;  %823 = vmatpush3.bf16.msra.mxu0 %v820_v6  ;;  %v209_v40 = vld [vmem:[%s1123_s1 + $0x68] sm:$0xff]  ;;  %v800_v41 = vpack.c.bf16 %v598_v37, %v597_v36  ;;  %v600_v43 = vld [vmem:[%s1123_s1 + $0xd8] sm:$0xff]  ;;  %v210_v45 = vld [vmem:[%s1123_s1 + $0x70] sm:$0xff] }
   0xe   : > { %s623_s26 = sshll.u32 %s1127_s13, 4  ;;  %825 = vmatprep.subr.bf16.mxu0 %v824_v10  ;;  %v840_v44 = vpack.c.bf16 %v209_v40, %v208_v39  ;;  %v211_v46 = vld [vmem:[%s1123_s1 + $0x78] sm:$0xff]  ;;  %v804_v47 = vpack.c.bf16 %v600_v43, %v599_v42  ;;  %v601_v48 = vld [vmem:[%s1123_s1 + $0xe0] sm:$0xff]  ;;  %v602_v49 = vld [vmem:[%s1123_s1 + $0xe8] sm:$0xff]  ;;  %s588_s20 = sshll.u32 %s1127_s13, 1 }
   0xf   : > { %s172_s8 = scalar_lea.vmem %s1122_s0, %s623_s26  ;;  %791 = vmatpush3.bf16.msra.mxu1 %v788_v22  ;;  %v844_v50 = vpack.c.bf16 %v211_v46, %v210_v45  ;;  %v605_v51 = vld [vmem:[%s1123_s1 + $0x100] sm:$0xff]  ;;  %v606_v52 = vld [vmem:[%s1123_s1 + $0x108] sm:$0xff]  ;;  %v808_v53 = vpack.c.bf16 %v602_v49, %v601_v48  ;;  %v603_v54 = vld [vmem:[%s1123_s1 + $0xf0] sm:$0xff]  ;;  %s177_s19 = scalar_lea.vmem %s1124_s2, %s623_s26 }
  0x10   : > { %v968_v16 = vld [vmem:[%s172_s8] sm:$0xff]  ;;  %v970_v17 = vld [vmem:[%s172_s8 + $0x8] sm:$0xff]  ;;  %793 = vmatprep.subr.bf16.mxu1 %v792_v29  ;;  %v604_v55 = vld [vmem:[%s1123_s1 + $0xf8] sm:$0xff]  ;;  %v848_v56 = vpack.c.bf16 %v606_v52, %v605_v51  ;;  %s181_s22 = scalar_lea.vmem %s1125_s3, %s588_s20 }
  0x11   : > { %v184_v18 = vrot.slane %v968_v16, 7  ;;  %v185_v19 = vrot.slane %v970_v17, 7  ;;  %711 = vmatprep.mubr.f32.mxu1 %v968_v16  ;;  %827 = vmatpush3.bf16.msra.mxu0 %v824_v10  ;;  %v191_v57 = vrot.slane %v968_v16, 1  ;;  %v192_v58 = vrot.slane %v970_v17, 1  ;;  %v607_v59 = vld [vmem:[%s1123_s1 + $0x110] sm:$0xff]  ;;  %v608_v60 = vld [vmem:[%s1123_s1 + $0x118] sm:$0xff] }
  0x12   : > { %829 = vmatprep.subr.bf16.mxu0 %v828_v24  ;;  %v812_v61 = vpack.c.bf16 %v604_v55, %v603_v54  ;;  %v852_v63 = vpack.c.bf16 %v608_v60, %v607_v59  ;;  %v609_v1 = vld [vmem:[%s1123_s1 + $0x120] sm:$0xff]  ;;  %v610_v2 = vld [vmem:[%s1123_s1 + $0x128] sm:$0xff]  ;;  %v611_v4 = vld [vmem:[%s1123_s1 + $0x130] sm:$0xff] }
  0x13   : > { %v190_v25 = vsel %vm188_vm0, %v185_v19, %v184_v18  ;;  %795 = vmatpush3.bf16.msra.mxu1 %v792_v29  ;;  %v189_v62 = vsel %vm188_vm0, %v184_v18, %v185_v19  ;;  %v194_v0 = vsel %vm193_vm1, %v191_v57, %v192_v58  ;;  %v856_v3 = vpack.c.bf16 %v610_v2, %v609_v1  ;;  %v612_v5 = vld [vmem:[%s1123_s1 + $0x138] sm:$0xff]  ;;  %v613_v7 = vld [vmem:[%s1123_s1 + $0x140] sm:$0xff]  ;;  %v614_v8 = vld [vmem:[%s1123_s1 + $0x148] sm:$0xff] }
  0x14   : > { %746 = vmatprep.mubr.f32.mxu0 %v190_v25  ;;  %797 = vmatprep.subr.bf16.mxu1 %v796_v35  ;;  %v860_v6 = vpack.c.bf16 %v612_v5, %v611_v4  ;;  %v864_v10 = vpack.c.bf16 %v614_v8, %v613_v7  ;;  %v615_v11 = vld [vmem:[%s1123_s1 + $0x150] sm:$0xff]  ;;  %v616_v12 = vld [vmem:[%s1123_s1 + $0x158] sm:$0xff]  ;;  %v617_v14 = vld [vmem:[%s1123_s1 + $0x160] sm:$0xff]  ;;  %v195_v20 = vsel %vm193_vm1, %v192_v58, %v191_v57 }
  0x15   : > { %831 = vmatpush3.bf16.msra.mxu0 %v828_v24  ;;  %v868_v13 = vpack.c.bf16 %v616_v12, %v615_v11  ;;  %v618_v15 = vld [vmem:[%s1123_s1 + $0x168] sm:$0xff]  ;;  %v620_v18 = vld [vmem:[%s1123_s1 + $0x178] sm:$0xff] }
  0x16   : > { %833 = vmatprep.subr.bf16.mxu0 %v832_v32  ;;  %v872_v16 = vpack.c.bf16 %v618_v15, %v617_v14 }
  0x17   : > { %799 = vmatpush3.bf16.msra.mxu1 %v796_v35 }
  0x18   : > { %801 = vmatprep.subr.bf16.mxu1 %v800_v41 }
  0x19   : > { %835 = vmatpush3.bf16.msra.mxu0 %v832_v32 }
  0x1a   : > { %837 = vmatprep.subr.bf16.mxu0 %v836_v38 }
  0x1b   : > { %803 = vmatpush3.bf16.msra.mxu1 %v800_v41 }
  0x1c   : > { %805 = vmatprep.subr.bf16.mxu1 %v804_v47 }
  0x1d   : > { %839 = vmatpush3.bf16.msra.mxu0 %v836_v38 }
  0x1e   : > { %841 = vmatprep.subr.bf16.mxu0 %v840_v44 }
  0x1f   : > { %807 = vmatpush3.bf16.msra.mxu1 %v804_v47 }
  0x20   : > { %809 = vmatprep.subr.bf16.mxu1 %v808_v53 }
  0x21   : > { %843 = vmatpush3.bf16.msra.mxu0 %v840_v44 }
  0x22   : > { %845 = vmatprep.subr.bf16.mxu0 %v844_v50 }
  0x23   : > { %811 = vmatpush3.bf16.msra.mxu1 %v808_v53 }
  0x24   : > { %813 = vmatprep.subr.bf16.mxu1 %v812_v61 }
  0x25   : > { %847 = vmatpush3.bf16.msra.mxu0 %v844_v50 }
  0x26   : > { %849 = vmatprep.subr.bf16.mxu0 %v848_v56 }
  0x27   : > { %815 = vmatpush3.bf16.msra.mxu1 %v812_v61 }
  0x28   : > { %747 = vmatmul.mubr.f32.vlgmr.msra.gmra.mrb[0].mxu0 %v189_v62 }
  0x29   : > { %851 = vmatpush3.bf16.msra.mxu0 %v848_v56  ;;  %781 = vmatprep.mubr.f32.mxu0 %v194_v0 }
  0x2a   : > { %853 = vmatprep.subr.bf16.mxu0 %v852_v63  ;;  %712 = vmatmul.mubr.f32.vlgmr.msra.gmra.mrb[0].mxu1 %v970_v17  ;;  %v619_v17 = vld [vmem:[%s1123_s1 + $0x170] sm:$0xff] }
  0x2b   : > { %v876_v19 = vpack.c.bf16 %v620_v18, %v619_v17 }
  0x2d   : > { %855 = vmatpush3.bf16.msra.mxu0 %v852_v63 }
  0x2e   : > { %857 = vmatprep.subr.bf16.mxu0 %v856_v3 }
  0x31   : > { %859 = vmatpush3.bf16.msra.mxu0 %v856_v3 }
  0x32   : > { %861 = vmatprep.subr.bf16.mxu0 %v860_v6 }
  0x35   : > { %863 = vmatpush3.bf16.msra.mxu0 %v860_v6 }
  0x36   : > { %865 = vmatprep.subr.bf16.mxu0 %v864_v10 }
  0x39   : > { %867 = vmatpush3.bf16.msra.mxu0 %v864_v10 }
  0x3a   : > { %869 = vmatprep.subr.bf16.mxu0 %v868_v13 }
  0x3d   : > { %871 = vmatpush3.bf16.msra.mxu0 %v868_v13 }
  0x3e   : > { %873 = vmatprep.subr.bf16.mxu0 %v872_v16 }
  0x41   : > { %875 = vmatpush3.bf16.msra.mxu0 %v872_v16 }
  0x42   : > { %877 = vmatprep.subr.bf16.mxu0 %v876_v19 }
  0x45   : > { %879 = vmatpush3.bf16.msra.mxu0 %v876_v19 }
  0x48   : > { %782 = vmatmul.mubr.f32.vlgmr.msra.gmra.mrb[0].mxu0 %v195_v20 }
  0xfd   : > { %v713_v21 = vpop.f32.mrb[0].mxu1 }
  0xfe   : > { %v295_v22 = vpop.f32.mrb[1].mxu1 }
 0x11b   : > { %v783_v23 = vpop.f32.mrb[0].mxu0 }
 0x11c   : > { %v880_v24 = vadd.f32 %v783_v23, %v713_v21  ;;  %v462_v25 = vpop.f32.mrb[1].mxu0 }
 0x11d   : > { %v881_v26 = vadd.f32 %v462_v25, %v295_v22 }
 0x11e   : > { %474 = vst [vmem:[%s177_s19 + $0x8] sm:$0xff] %v880_v24  ;;  %v484_v27 = vmul.f32 %v880_v24, %v880_v24 }
 0x11f   : > { %473 = vst [vmem:[%s177_s19] sm:$0xff] %v881_v26  ;;  %v475_v28 = vadd.f32 %v881_v26, %v880_v24  ;;  %v483_v29 = vmul.f32 %v881_v26, %v881_v26 }
 0x121   : > { %v476_v9 = vrot.slane %v475_v28, 4  ;;  %v485_v30 = vadd.f32 %v484_v27, %v483_v29 }
 0x123   : > { %v477_v31 = vadd.f32 %v476_v9, %v475_v28  ;;  %v486_v32 = vrot.slane %v485_v30, 4 }
 0x125   : > { %v478_v33 = vrot.slane %v477_v31, 2  ;;  %v487_v34 = vadd.f32 %v486_v32, %v485_v30 }
 0x127   : > { %v479_v35 = vadd.f32 %v478_v33, %v477_v31  ;;  %v488_v36 = vrot.slane %v487_v34, 2 }
 0x129   : > { %v480_v37 = vrot.slane %v479_v35, 1  ;;  %v489_v38 = vadd.f32 %v488_v36, %v487_v34 }
 0x12b   : > { %v481_v39 = vadd.f32 %v480_v37, %v479_v35  ;;  %v490_v40 = vrot.slane %v489_v38, 1 }
 0x12d   : > { %482 = vst [vmem:[%s181_s22] sm:$0x1] %v481_v39  ;;  %v491_v41 = vadd.f32 %v490_v40, %v489_v38 }
 0x12f   : > { %492 = vst [vmem:[%s181_s22 + $0x1] sm:$0x1] %v491_v41 }
 0x130 PF: > { %s14_s12 = sadd.s32 1, %s898_s12  }
 0x131   : > { %p11_p4 = scmp.ge.s32.totalorder %s14_s12, 4  }
 0x133   :  { %13 = sbr.rel (!%p11_p4) target bundleno = 1 (0x1), region = 72 }

</bundles_post_ra>
